<compile_context>
chip_gen: v6e
topology: v6e:2x2x1
jax: 0.10.0
libtpu: 0.0.40
codegen_flags: <defaults>
</compile_context>

<pallas_src>
import functools

import jax
import jax.numpy as jnp
import numpy as np
from jax.experimental import pallas as pl
from jax.experimental.pallas import tpu as pltpu


def _round_up(x, m):
    return ((x + m - 1) // m) * m


def _pad_to(x, shape):
    pads = [(0, t - s) for s, t in zip(x.shape, shape)]
    if all(p == (0, 0) for p in pads):
        return x
    return jnp.pad(x, pads)


def _interleave_cols(wa, wb, tn2):
    """[A0 | B0 | A1 | B1 | ...] with tn2-wide column groups (exact layout plumbing)."""
    r, hp = wa.shape
    n = hp // tn2
    wa3 = wa.reshape(r, n, tn2)
    wb3 = wb.reshape(r, n, tn2)
    return jnp.stack([wa3, wb3], axis=2).reshape(r, 2 * hp)


def club_kernel(a_ref, y_ref, w_ref, b_ref,          # inputs
                lld_ref, bound_ref,                  # SMEM scalar outputs
                hg_ref, accp_ref, accd_ref,          # scratch
                *, tn2, n1, inv_bsz):
    """1-D sequential ("arbitrary") grid of 2*n1 steps:
         steps [0, n1)    : first layers of both MLPs (one TB-wide W1 tile each)
         steps [n1, 2*n1) : second layers + CLUB sums (one tn2-wide output tile each)
    """
    j = pl.program_id(0)
    nt = pl.num_programs(0)

    @pl.when(j == 0)
    def _():
        accp_ref[...] = jnp.zeros_like(accp_ref)
        accd_ref[...] = jnp.zeros_like(accd_ref)

    # ---- phase 1: hg slot j = tanh(a @ [W1_mu | W1_lv] tile + b1 tile) ----
    @pl.when(j < n1)
    def _():
        z = jnp.dot(a_ref[...], w_ref[...],
                    preferred_element_type=jnp.float32) + b_ref[...]
        hg_ref[j] = jnp.tanh(z).astype(hg_ref.dtype)

    # ---- phase 2: one tn2-wide column tile of mu / logvar + CLUB partial sums ----
    @pl.when(j >= n1)
    def _():
        # K-tiled second-layer matmuls over the hg slots (all slices static).
        mu_acc = jnp.dot(hg_ref[0, :, :tn2], w_ref[0:tn2, :tn2],
                         preferred_element_type=jnp.float32)
        lv_acc = jnp.dot(hg_ref[0, :, tn2:], w_ref[0:tn2, tn2:],
                         preferred_element_type=jnp.float32)
        for t in range(1, n1):                                # static, unrolled
            mu_acc += jnp.dot(hg_ref[t, :, :tn2],
                              w_ref[t * tn2:(t + 1) * tn2, :tn2],
                              preferred_element_type=jnp.float32)
            lv_acc += jnp.dot(hg_ref[t, :, tn2:],
                              w_ref[t * tn2:(t + 1) * tn2, tn2:],
                              preferred_element_type=jnp.float32)

        mu = mu_acc + b_ref[:, :tn2]                          # (B, tn2) f32
        logvar = jnp.tanh(lv_acc + b_ref[:, tn2:])

        inv_2var = 0.5 * jnp.exp(-logvar)                     # 1 / (2 * exp(logvar))
        y = y_ref[...]

        # negative via centered moments:
        #   mean_j (mu_j - mu_i)^2 = Var(mu) + (mu_i - E[mu])^2   (exact)
        mean_mu = jnp.mean(mu, axis=0, keepdims=True)
        dev = mu - mean_mu
        var_mu = jnp.mean(dev * dev, axis=0, keepdims=True)

        neg_pos = (mu - y) ** 2 * inv_2var                    # = -positive
        diff = (var_mu + dev * dev) * inv_2var - neg_pos      # = positive - negative

        # Lane-folded accumulation: pure VPU adds; cross-lane reduce deferred.
        p_acc = neg_pos[:, 0:128]
        d_acc = diff[:, 0:128]
        for c in range(1, tn2 // 128):
            p_acc = p_acc + neg_pos[:, c * 128:(c + 1) * 128]
            d_acc = d_acc + diff[:, c * 128:(c + 1) * 128]
        accp_ref[...] += p_acc
        accd_ref[...] += d_acc

    # ---- finalize: single cross-lane reduce, scalar SMEM writes ----
    @pl.when(j == nt - 1)
    def _():
        lld_ref[0, 0] = -jnp.sum(accp_ref[...]) * inv_bsz
        bound_ref[0, 0] = jnp.sum(accd_ref[...]) * inv_bsz


def _vmem_limit_bytes(B, Hp, TB):
    tn2 = TB // 2
    n1 = Hp // tn2
    bp = max(_round_up(B, 8), 8)
    resident = (
        2 * bp * Hp * 2            # modal_a bf16 (grid-invariant, double-buffered)
        + n1 * bp * TB * 2         # hg scratch bf16
        + 2 * bp * 128 * 4         # lane accumulators f32
    )
    per_step = (
        Hp * TB * 2                # fused weight tile bf16
        + 8 * TB * 4               # fused bias tile f32 (padded to 8 sublanes)
        + bp * tn2 * 4             # modal_b tile f32
    )
    need = resident + 2 * per_step     # streamed tiles are double-buffered
    try:
        cap = pltpu.get_tpu_info().vmem_capacity_bytes
    except Exception:
        cap = 64 * 1024 * 1024         # conservative (v7x-sized) fallback
    return int(min(max(int(1.5 * need) + (8 << 20), 32 << 20), int(0.9 * cap)))


def club_forward(modal_a, modal_b, params, *, tile_cols=1024):
    """Returns (lld, bound) scalars, matching CLUB.forward."""
    B, H = modal_a.shape
    Hp = _round_up(H, 128)
    TB = max(256, (min(tile_cols, 2 * Hp) // 256) * 256)   # fused-tile width (mult of 256)
    tn2 = TB // 2                                          # per-MLP output column tile
    Hp = _round_up(Hp, tn2)                                # zero padding is exact for CLUB
    n1 = Hp // tn2                                         # tiles per MLP / phase length

    # --- layout plumbing (exact): pad, interleave, fuse, cast MXU inputs to bf16 ---
    a = _pad_to(modal_a, (B, Hp)).astype(jnp.bfloat16)
    y = _pad_to(modal_b, (B, Hp)).astype(jnp.float32)

    w1 = _interleave_cols(_pad_to(params["w1_mu"], (Hp, Hp)),
                          _pad_to(params["w1_lv"], (Hp, Hp)), tn2)
    w2 = _interleave_cols(_pad_to(params["w2_mu"], (Hp, Hp)),
                          _pad_to(params["w2_lv"], (Hp, Hp)), tn2)
    w = jnp.concatenate([w1, w2], axis=1).astype(jnp.bfloat16)     # (Hp, 4*Hp)

    b1 = _interleave_cols(_pad_to(params["b1_mu"], (1, Hp)),
                          _pad_to(params["b1_lv"], (1, Hp)), tn2)
    b2 = _interleave_cols(_pad_to(params["b2_mu"], (1, Hp)),
                          _pad_to(params["b2_lv"], (1, Hp)), tn2)
    b = jnp.concatenate([b1, b2], axis=1).astype(jnp.float32)      # (1, 4*Hp)

    smem_out = pl.BlockSpec(memory_space=pltpu.MemorySpace.SMEM)

    grid_spec = pltpu.PrefetchScalarGridSpec(
        num_scalar_prefetch=0,
        grid=(2 * n1,),
        in_specs=[
            pl.BlockSpec((B, Hp), lambda j: (0, 0)),                      # modal_a (resident)
            pl.BlockSpec((B, tn2), lambda j: (0, jnp.maximum(j - n1, 0))),  # modal_b col tile
            pl.BlockSpec((Hp, TB), lambda j: (0, j)),                     # fused weight stream
            pl.BlockSpec((1, TB), lambda j: (0, j)),                      # fused bias stream
        ],
        out_specs=(smem_out, smem_out),
        scratch_shapes=[
            pltpu.VMEM((n1, B, TB), jnp.bfloat16),   # tanh(a@W1+b1), tile-slotted
            pltpu.VMEM((B, 128), jnp.float32),       # sum(-positive) lane partials
            pltpu.VMEM((B, 128), jnp.float32),       # sum(positive - negative) lane partials
        ],
    )

    kernel = functools.partial(club_kernel, tn2=tn2, n1=n1, inv_bsz=1.0 / B)

    lld, bound = pl.pallas_call(
        kernel,
        out_shape=(jax.ShapeDtypeStruct((1, 1), jnp.float32),
                   jax.ShapeDtypeStruct((1, 1), jnp.float32)),
        grid_spec=grid_spec,
        compiler_params=pltpu.CompilerParams(
            dimension_semantics=("arbitrary",),               # sequential reduction grid
            vmem_limit_bytes=_vmem_limit_bytes(B, Hp, TB)),
    )(a, y, w, b)
    return lld[0, 0], bound[0, 0]


def club_reference(modal_a, modal_b, params):
    """Plain-JAX f32 reference following the PyTorch code literally (tile/repeat)."""
    h = jnp.tanh(modal_a @ params["w1_mu"] + params["b1_mu"])
    mu = h @ params["w2_mu"] + params["b2_mu"]
    g = jnp.tanh(modal_a @ params["w1_lv"] + params["b1_lv"])
    logvar = jnp.tanh(g @ params["w2_lv"] + params["b2_lv"])

    bsz = mu.shape[0]
    pred_tile = jnp.repeat(mu[:, None, :], bsz, axis=1)   # [i, j] = mu[i]
    true_tile = jnp.repeat(mu[None, :, :], bsz, axis=0)   # [i, j] = mu[j]
    positive = -(mu - modal_b) ** 2 / 2.0 / jnp.exp(logvar)
    negative = -jnp.mean((true_tile - pred_tile) ** 2, axis=1) / 2.0 / jnp.exp(logvar)
    lld = jnp.mean(jnp.sum(positive, -1))
    bound = jnp.mean(jnp.sum(positive, -1) - jnp.sum(negative, -1))
    return lld, bound


def init_params(key, hidden_size):
    """Deterministic init mimicking nn.Linear default (uniform +/- 1/sqrt(in))."""
    ks = jax.random.split(key, 8)
    bnd = 1.0 / np.sqrt(hidden_size)

    def u(k, shape):
        return jax.random.uniform(k, shape, jnp.float32, -bnd, bnd)

    return {
        # weights stored as (in, out) == PyTorch weight transposed
        "w1_mu": u(ks[0], (hidden_size, hidden_size)),
        "b1_mu": u(ks[1], (1, hidden_size)),
        "w2_mu": u(ks[2], (hidden_size, hidden_size)),
        "b2_mu": u(ks[3], (1, hidden_size)),
        "w1_lv": u(ks[4], (hidden_size, hidden_size)),
        "b1_lv": u(ks[5], (1, hidden_size)),
        "w2_lv": u(ks[6], (hidden_size, hidden_size)),
        "b2_lv": u(ks[7], (1, hidden_size)),
    }


if __name__ == "__main__":
    batch, hidden = 8, 32
    key = jax.random.PRNGKey(0)
    k_a, k_b, k_p = jax.random.split(key, 3)

    modal_a = jax.random.normal(k_a, (batch, hidden), jnp.float32)
    modal_b = jax.random.normal(k_b, (batch, hidden), jnp.float32)
    params = init_params(k_p, hidden)

    lld, bound = club_forward(modal_a, modal_b, params)
    jax.block_until_ready((lld, bound))

    # bf16 MXU inputs (f32 accumulate) => compare against the f32 reference with a
    # tolerance covering bf16 input rounding.
    lld_ref, bound_ref = club_reference(modal_a, modal_b, params)
    np.testing.assert_allclose(np.asarray(lld), np.asarray(lld_ref),
                               rtol=2e-2, atol=2e-2)
    np.testing.assert_allclose(np.asarray(bound), np.asarray(bound_ref),
                               rtol=2e-2, atol=2e-2)

    print("KERNEL_OK")
</pallas_src>

<mosaic_0001>
module attributes {stable_mosaic.version = 11 : i64} {
  func.func @club_kernel(%arg0: i32, %arg1: memref<8x128xbf16, #tpu.memory_space<vmem>>, %arg2: memref<8x128xf32, #tpu.memory_space<vmem>>, %arg3: memref<128x256xbf16, #tpu.memory_space<vmem>>, %arg4: memref<1x256xf32, #tpu.memory_space<vmem>>, %arg5: memref<1x1xf32, #tpu.memory_space<smem>>, %arg6: memref<1x1xf32, #tpu.memory_space<smem>>, %arg7: memref<1x8x256xbf16, #tpu.memory_space<vmem>>, %arg8: memref<8x128xf32, #tpu.memory_space<vmem>>, %arg9: memref<8x128xf32, #tpu.memory_space<vmem>>) attributes {dimension_semantics = [#tpu.dimension_semantics<arbitrary>], iteration_bounds = array<i64: 2>, scalar_prefetch = 0 : i64, scratch_operands = 3 : i64, tpu.core_type = #tpu.core_type<tc>, window_params = [{pipeline_mode = #tpu.pipeline_mode<synchronous>, transform_indices = @transform_0, window_bounds = array<i64: 8, 128>}, {transform_indices = @transform_1, window_bounds = array<i64: 8, 128>}, {transform_indices = @transform_2, window_bounds = array<i64: 128, 256>}, {transform_indices = @transform_3, window_bounds = array<i64: 1, 256>}, {transform_indices = @transform_4, window_bounds = array<i64: 1, 1>}, {transform_indices = @transform_5, window_bounds = array<i64: 1, 1>}]} {
    %c0_i32 = arith.constant 0 : i32
    %0 = arith.cmpi eq, %arg0, %c0_i32 : i32
    %1 = arith.extui %0 : i1 to i32
    %c0_i32_0 = arith.constant 0 : i32
    %2 = arith.cmpi ne, %1, %c0_i32_0 : i32
    scf.if %2 {
      %cst = arith.constant 0.000000e+00 : f32
      %12 = vector.broadcast %cst : f32 to vector<8x128xf32>
      %c0 = arith.constant 0 : index
      %c0_6 = arith.constant 0 : index
      %13 = vector.load %arg8[%c0, %c0_6] : memref<8x128xf32, #tpu.memory_space<vmem>>, vector<8x128xf32>
      tpu.vector_store %arg8[%c0, %c0_6], %12 {strides = array<i32>} : memref<8x128xf32, #tpu.memory_space<vmem>>, vector<8x128xf32>,
      %cst_7 = arith.constant 0.000000e+00 : f32
      %14 = vector.broadcast %cst_7 : f32 to vector<8x128xf32>
      %c0_8 = arith.constant 0 : index
      %c0_9 = arith.constant 0 : index
      %15 = vector.load %arg9[%c0_8, %c0_9] : memref<8x128xf32, #tpu.memory_space<vmem>>, vector<8x128xf32>
      tpu.vector_store %arg9[%c0_8, %c0_9], %14 {strides = array<i32>} : memref<8x128xf32, #tpu.memory_space<vmem>>, vector<8x128xf32>,
    } else {
    }
    %c1_i32 = arith.constant 1 : i32
    %3 = arith.cmpi slt, %arg0, %c1_i32 : i32
    %4 = arith.extui %3 : i1 to i32
    %c0_i32_1 = arith.constant 0 : i32
    %5 = arith.cmpi ne, %4, %c0_i32_1 : i32
    scf.if %5 {
      %c0 = arith.constant 0 : index
      %c0_6 = arith.constant 0 : index
      %12 = vector.load %arg1[%c0, %c0_6] : memref<8x128xbf16, #tpu.memory_space<vmem>>, vector<8x128xbf16>
      %c0_7 = arith.constant 0 : index
      %c0_8 = arith.constant 0 : index
      %13 = vector.load %arg3[%c0_7, %c0_8] : memref<128x256xbf16, #tpu.memory_space<vmem>>, vector<128x256xbf16>
      %cst = arith.constant dense<0.000000e+00> : vector<8x256xf32>
      %14 = tpu.matmul %12, %13, %cst {dimension_numbers = #tpu.dot_dimension_numbers<[1], [0], [0], [1], [0, 0, 1, 1], [], []>} : vector<8x128xbf16>, vector<128x256xbf16>, vector<8x256xf32> -> vector<8x256xf32>
      %c0_9 = arith.constant 0 : index
      %c0_10 = arith.constant 0 : index
      %15 = vector.load %arg4[%c0_9, %c0_10] : memref<1x256xf32, #tpu.memory_space<vmem>>, vector<1x256xf32>
      %16 = vector.broadcast %15 : vector<1x256xf32> to vector<8x256xf32>
      %17 = arith.addf %14, %16 : vector<8x256xf32>
      %18 = math.tanh %17 : vector<8x256xf32>
      %19 = arith.truncf %18 : vector<8x256xf32> to vector<8x256xbf16>
      %20 = arith.index_cast %arg0 : i32 to index
      %c0_11 = arith.constant 0 : index
      %c0_12 = arith.constant 0 : index
      %21 = vector.load %arg7[%20, %c0_11, %c0_12] : memref<1x8x256xbf16, #tpu.memory_space<vmem>>, vector<1x8x256xbf16>
      %22 = vector.shape_cast %21 : vector<1x8x256xbf16> to vector<8x256xbf16>
      %23 = vector.shape_cast %19 : vector<8x256xbf16> to vector<1x8x256xbf16>
      tpu.vector_store %arg7[%20, %c0_11, %c0_12], %23 {strides = array<i32>} : memref<1x8x256xbf16, #tpu.memory_space<vmem>>, vector<1x8x256xbf16>,
    } else {
    }
    %c1_i32_2 = arith.constant 1 : i32
    %6 = arith.cmpi sge, %arg0, %c1_i32_2 : i32
    %7 = arith.extui %6 : i1 to i32
    %c0_i32_3 = arith.constant 0 : i32
    %8 = arith.cmpi ne, %7, %c0_i32_3 : i32
    scf.if %8 {
      %c0 = arith.constant 0 : index
      %c0_6 = arith.constant 0 : index
      %c0_7 = arith.constant 0 : index
      %12 = vector.load %arg7[%c0, %c0_6, %c0_7] : memref<1x8x256xbf16, #tpu.memory_space<vmem>>, vector<1x8x128xbf16>
      %13 = vector.shape_cast %12 : vector<1x8x128xbf16> to vector<8x128xbf16>
      %c0_8 = arith.constant 0 : index
      %c0_9 = arith.constant 0 : index
      %14 = vector.load %arg3[%c0_8, %c0_9] : memref<128x256xbf16, #tpu.memory_space<vmem>>, vector<128x128xbf16>
      %cst = arith.constant dense<0.000000e+00> : vector<8x128xf32>
      %15 = tpu.matmul %13, %14, %cst {dimension_numbers = #tpu.dot_dimension_numbers<[1], [0], [0], [1], [0, 0, 1, 1], [], []>} : vector<8x128xbf16>, vector<128x128xbf16>, vector<8x128xf32> -> vector<8x128xf32>
      %c0_10 = arith.constant 0 : index
      %c0_11 = arith.constant 0 : index
      %c128 = arith.constant 128 : index
      %16 = vector.load %arg7[%c0_10, %c0_11, %c128] : memref<1x8x256xbf16, #tpu.memory_space<vmem>>, vector<1x8x128xbf16>
      %17 = vector.shape_cast %16 : vector<1x8x128xbf16> to vector<8x128xbf16>
      %c0_12 = arith.constant 0 : index
      %c128_13 = arith.constant 128 : index
      %18 = vector.load %arg3[%c0_12, %c128_13] : memref<128x256xbf16, #tpu.memory_space<vmem>>, vector<128x128xbf16>
      %cst_14 = arith.constant dense<0.000000e+00> : vector<8x128xf32>
      %19 = tpu.matmul %17, %18, %cst_14 {dimension_numbers = #tpu.dot_dimension_numbers<[1], [0], [0], [1], [0, 0, 1, 1], [], []>} : vector<8x128xbf16>, vector<128x128xbf16>, vector<8x128xf32> -> vector<8x128xf32>
      %c0_15 = arith.constant 0 : index
      %c0_16 = arith.constant 0 : index
      %20 = vector.load %arg4[%c0_15, %c0_16] : memref<1x256xf32, #tpu.memory_space<vmem>>, vector<1x128xf32>
      %21 = vector.broadcast %20 : vector<1x128xf32> to vector<8x128xf32>
      %22 = arith.addf %15, %21 : vector<8x128xf32>
      %c0_17 = arith.constant 0 : index
      %c128_18 = arith.constant 128 : index
      %23 = vector.load %arg4[%c0_17, %c128_18] : memref<1x256xf32, #tpu.memory_space<vmem>>, vector<1x128xf32>
      %24 = vector.broadcast %23 : vector<1x128xf32> to vector<8x128xf32>
      %25 = arith.addf %19, %24 : vector<8x128xf32>
      %26 = math.tanh %25 : vector<8x128xf32>
      %cst_19 = arith.constant 0.000000e+00 : f32
      %27 = vector.broadcast %cst_19 : f32 to vector<8x128xf32>
      %28 = arith.subf %27, %26 : vector<8x128xf32>
      %29 = math.exp %28 : vector<8x128xf32>
      %cst_20 = arith.constant 5.000000e-01 : f32
      %30 = vector.broadcast %cst_20 : f32 to vector<8x128xf32>
      %31 = arith.mulf %30, %29 : vector<8x128xf32>
      %c0_21 = arith.constant 0 : index
      %c0_22 = arith.constant 0 : index
      %32 = vector.load %arg2[%c0_21, %c0_22] : memref<8x128xf32, #tpu.memory_space<vmem>>, vector<8x128xf32>
      %cst_23 = arith.constant dense<0.000000e+00> : vector<128xf32>
      %33 = vector.multi_reduction <add>, %22, %cst_23 [0] : vector<8x128xf32> to vector<128xf32>
      %34 = vector.shape_cast %33 : vector<128xf32> to vector<1x128xf32>
      %cst_24 = arith.constant 8.000000e+00 : f32
      %35 = vector.broadcast %cst_24 : f32 to vector<1x128xf32>
      %36 = arith.divf %34, %35 : vector<1x128xf32>
      %37 = vector.broadcast %36 : vector<1x128xf32> to vector<8x128xf32>
      %38 = arith.subf %22, %37 : vector<8x128xf32>
      %39 = arith.mulf %38, %38 : vector<8x128xf32>
      %cst_25 = arith.constant dense<0.000000e+00> : vector<128xf32>
      %40 = vector.multi_reduction <add>, %39, %cst_25 [0] : vector<8x128xf32> to vector<128xf32>
      %41 = vector.shape_cast %40 : vector<128xf32> to vector<1x128xf32>
      %cst_26 = arith.constant 8.000000e+00 : f32
      %42 = vector.broadcast %cst_26 : f32 to vector<1x128xf32>
      %43 = arith.divf %41, %42 : vector<1x128xf32>
      %44 = arith.subf %22, %32 : vector<8x128xf32>
      %45 = arith.mulf %44, %44 : vector<8x128xf32>
      %46 = arith.mulf %45, %31 : vector<8x128xf32>
      %47 = arith.mulf %38, %38 : vector<8x128xf32>
      %48 = vector.broadcast %43 : vector<1x128xf32> to vector<8x128xf32>
      %49 = arith.addf %48, %47 : vector<8x128xf32>
      %50 = arith.mulf %49, %31 : vector<8x128xf32>
      %51 = arith.subf %50, %46 : vector<8x128xf32>
      %c0_27 = arith.constant 0 : index
      %c0_28 = arith.constant 0 : index
      %52 = vector.load %arg8[%c0_27, %c0_28] : memref<8x128xf32, #tpu.memory_space<vmem>>, vector<8x128xf32>
      %53 = arith.addf %52, %46 : vector<8x128xf32>
      %c0_29 = arith.constant 0 : index
      %c0_30 = arith.constant 0 : index
      %54 = vector.load %arg8[%c0_29, %c0_30] : memref<8x128xf32, #tpu.memory_space<vmem>>, vector<8x128xf32>
      tpu.vector_store %arg8[%c0_29, %c0_30], %53 {strides = array<i32>} : memref<8x128xf32, #tpu.memory_space<vmem>>, vector<8x128xf32>,
      %c0_31 = arith.constant 0 : index
      %c0_32 = arith.constant 0 : index
      %55 = vector.load %arg9[%c0_31, %c0_32] : memref<8x128xf32, #tpu.memory_space<vmem>>, vector<8x128xf32>
      %56 = arith.addf %55, %51 : vector<8x128xf32>
      %c0_33 = arith.constant 0 : index
      %c0_34 = arith.constant 0 : index
      %57 = vector.load %arg9[%c0_33, %c0_34] : memref<8x128xf32, #tpu.memory_space<vmem>>, vector<8x128xf32>
      tpu.vector_store %arg9[%c0_33, %c0_34], %56 {strides = array<i32>} : memref<8x128xf32, #tpu.memory_space<vmem>>, vector<8x128xf32>,
    } else {
    }
    %c1_i32_4 = arith.constant 1 : i32
    %9 = arith.cmpi eq, %arg0, %c1_i32_4 : i32
    %10 = arith.extui %9 : i1 to i32
    %c0_i32_5 = arith.constant 0 : i32
    %11 = arith.cmpi ne, %10, %c0_i32_5 : i32
    scf.if %11 {
      %c0 = arith.constant 0 : index
      %c0_6 = arith.constant 0 : index
      %12 = vector.load %arg8[%c0, %c0_6] : memref<8x128xf32, #tpu.memory_space<vmem>>, vector<8x128xf32>
      %13 = vector.shape_cast %12 : vector<8x128xf32> to vector<1x8x128xf32>
      %cst = arith.constant dense<0.000000e+00> : vector<1xf32>
      %14 = vector.multi_reduction <add>, %13, %cst [1, 2] : vector<1x8x128xf32> to vector<1xf32>
      %15 = vector.shape_cast %14 : vector<1xf32> to vector<1x1x1xf32>
      %16 = vector.extract %15[0, 0, 0] : f32 from vector<1x1x1xf32>
      %cst_7 = arith.constant 0.000000e+00 : f32
      %17 = arith.subf %cst_7, %16 : f32
      %cst_8 = arith.constant 1.250000e-01 : f32
      %18 = arith.mulf %17, %cst_8 : f32
      %c0_9 = arith.constant 0 : index
      %c0_10 = arith.constant 0 : index
      %19 = memref.load %arg5[%c0_9, %c0_10] : memref<1x1xf32, #tpu.memory_space<smem>>
      memref.store %18, %arg5[%c0_9, %c0_10] : memref<1x1xf32, #tpu.memory_space<smem>>
      %c0_11 = arith.constant 0 : index
      %c0_12 = arith.constant 0 : index
      %20 = vector.load %arg9[%c0_11, %c0_12] : memref<8x128xf32, #tpu.memory_space<vmem>>, vector<8x128xf32>
      %21 = vector.shape_cast %20 : vector<8x128xf32> to vector<1x8x128xf32>
      %cst_13 = arith.constant dense<0.000000e+00> : vector<1xf32>
      %22 = vector.multi_reduction <add>, %21, %cst_13 [1, 2] : vector<1x8x128xf32> to vector<1xf32>
      %23 = vector.shape_cast %22 : vector<1xf32> to vector<1x1x1xf32>
      %24 = vector.extract %23[0, 0, 0] : f32 from vector<1x1x1xf32>
      %cst_14 = arith.constant 1.250000e-01 : f32
      %25 = arith.mulf %24, %cst_14 : f32
      %c0_15 = arith.constant 0 : index
      %c0_16 = arith.constant 0 : index
      %26 = memref.load %arg6[%c0_15, %c0_16] : memref<1x1xf32, #tpu.memory_space<smem>>
      memref.store %25, %arg6[%c0_15, %c0_16] : memref<1x1xf32, #tpu.memory_space<smem>>
    } else {
    }
    return
  }
  func.func @transform_0(%arg0: i32) -> (i32, i32) {
    %c0_i32 = arith.constant 0 : i32
    %c0_i32_0 = arith.constant 0 : i32
    %c0_i32_1 = arith.constant 0 : i32
    return %c0_i32, %c0_i32_0 : i32, i32
  }
  func.func @transform_1(%arg0: i32) -> (i32, i32) {
    %c1_i32 = arith.constant 1 : i32
    %0 = arith.subi %arg0, %c1_i32 : i32
    %c0_i32 = arith.constant 0 : i32
    %1 = arith.maxsi %0, %c0_i32 : i32
    %c0_i32_0 = arith.constant 0 : i32
    %c0_i32_1 = arith.constant 0 : i32
    return %c0_i32_0, %1 : i32, i32
  }
  func.func @transform_2(%arg0: i32) -> (i32, i32) {
    %c0_i32 = arith.constant 0 : i32
    %c0_i32_0 = arith.constant 0 : i32
    return %c0_i32, %arg0 : i32, i32
  }
  func.func @transform_3(%arg0: i32) -> (i32, i32) {
    %c0_i32 = arith.constant 0 : i32
    %c0_i32_0 = arith.constant 0 : i32
    return %c0_i32, %arg0 : i32, i32
  }
  func.func @transform_4(%arg0: i32) -> (i32, i32) {
    %c0_i32 = arith.constant 0 : i32
    %c0_i32_0 = arith.constant 0 : i32
    %c0_i32_1 = arith.constant 0 : i32
    return %c0_i32, %c0_i32_0 : i32, i32
  }
  func.func @transform_5(%arg0: i32) -> (i32, i32) {
    %c0_i32 = arith.constant 0 : i32
    %c0_i32_0 = arith.constant 0 : i32
    %c0_i32_1 = arith.constant 0 : i32
    return %c0_i32, %c0_i32_0 : i32, i32
  }
}

</mosaic_0001>

<bundles_post_ra>
// kernel: tpu_custom_call.1
= control target key start
LH: loop header
LB: loop body
LE: loop exit
PB: predicated region body
PF: predicated region fallthrough
CT: control target
= control target key end

     0   :  { %11 = vsyncpa [#allocation6], 0  ;;  %s1659_s0 = inlined_call_operand.hbm [shape: bf16[8,128], index: 0, kind: input, shape index: {}]   ;;  %s1660_s1 = inlined_call_operand.hbm [shape: f32[8,128], index: 1, kind: input, shape index: {}]   ;;  %s1661_s2 = inlined_call_operand.hbm [shape: bf16[128,512], index: 2, kind: input, shape index: {}]   ;;  %s1662_s3 = inlined_call_operand.vmem [shape: f32[1,512], index: 3, kind: input, shape index: {}]   ;;  %s1663_s4 = inlined_call_operand.hbm [shape: f32[1,1], index: 4, kind: output, shape index: {0}]   ;;  %s1664_s5 = inlined_call_operand.hbm [shape: f32[1,1], index: 5, kind: output, shape index: {1}]  }
   0x1   :  { %12 = vsyncpa [#allocation9], 0 }
   0x2   :  { %14 = vsyncpa [#allocation9 + $0x1], 0 }
   0x3   :  { %15 = vsyncpa [#allocation7], 0 }
   0x4   :  { %16 = vsyncpa [#allocation13], 0  ;;  %s1394_s18 = smov 0   ;;  %s1396_s19 = smov 0  }
   0x5   :  { %s1398_s20 = smov 0   ;;  %s1400_s21 = smov 0  }
   0x6   :  { %s1402_s22 = smov 0   ;;  %s1404_s23 = smov 0  }
   0x7   :  { %s1406_s24 = smov 0  }
   0x8 LB: > { %s1430_s25 = sadd.s32 4294967295, %s1350_s24   ;;  %s1433_s26 = sadd.s32 1, %s1350_s24   ;;  %s1350_s24 = sphi %s1406_s24, %s1692_s24   ;;  %s1346_s23 = sphi %s1404_s23, %s1691_s23   ;;  %s1342_s22 = sphi %s1402_s22, %s1690_s22   ;;  %s1338_s21 = sphi %s1400_s21, %s1689_s21   ;;  %s1334_s20 = sphi %s1398_s20, %s1688_s20   ;;  %s1330_s19 = sphi %s1396_s19, %s1687_s19   ;;  %s1326_s18 = sphi %s1394_s18, %s1686_s18  }
   0x9   : > { %p48_p0 = scmp.gt.s32.totalorder %s1430_s25, 0  ;;  %s899_s27 = sadd.s32 4294967295, %s1433_s26 }
   0xa   : > { %p51_p1 = scmp.gt.s32.totalorder %s899_s27, 0  ;;  %s56_s28 = sadd.s32 1, %s1346_s23 }
   0xb   : > { %s49_s29 = scalar_select %p48_p0, %s1430_s25, 0 }
   0xc   : > { %s1694_s27 = smov (!%p51_p1, %s899_s27), 0  ;;  %p63_p2 = scmp.ne.s32.totalorder %s1346_s23, %s1342_s22 }
   0xd   : > { %p64_p3 = scmp.eq.s32.totalorder %s1350_s24, 0  ;;  %s53_s30 = ssub.s32 %s49_s29, %s1694_s27 }
   0xe   : > { %s79_s6 = ssub.s32 %s1350_s24, %s1433_s26  ;;  %p54_p4 = scmp.eq.s32.totalorder %s53_s30, 0 }
   0xf   : > { %p1444_p5 = por %p64_p3, %p63_p2  ;;  %p80_p6 = scmp.eq.s32.totalorder %s79_s6, 0 }
  0x10   : > { %s82_s8 = sadd.s32 1, %s1334_s20  ;;  %p89_p7 = scmp.ne.s32.totalorder %s1334_s20, %s1330_s19 }
  0x11   : > { %s1450_s9 = scalar_select %p54_p4, %s1346_s23, %s56_s28  }
  0x12   : > { %s1453_s10 = scalar_select %p80_p6, %s1334_s20, %s82_s8  }
  0x13   : > { %1671 = sst [smem:[#allocation19_spill]] %s1450_s9  ;;  %p1054_p9 = scmp.lt.s32.totalorder %s1350_s24, 2 }
  0x14   : > { %p91_p10 = por %p89_p7, %p64_p3  ;;  %s198_s11 = sand.u32 1, %s1350_s24  }
  0x15   : > { %s200_s12 = sand.u32 1, %s1346_s23   ;;  %s905_s14 = sshll.u32 %s49_s29, 7 }
  0x16   : > { %s903_s13 = sshll.u32 %s200_s12, 3  ;;  %s1464_s17 = scalar_lea.hbm %s1660_s1, %s905_s14 }
  0x17   : > { %s202_s27 = scalar_lea.vmem [#allocation8], %s903_s13  ;;  %p1468_p11 = pnand %p1054_p9, %p1444_p5 }
  0x18   : > { %s212_s28 = sshll.u32 %s202_s27, 4  ;;  %p1472_p12 = pnand %p1054_p9, %p91_p10  ;;  %s213_s28 = int_to_ptr.vmem [resolvable:$true] %s212_s28 }
  0x19   : > { %s1476_s29 = scalar_lea.sflag [#allocation9], %s198_s11  ;;  %s1174_s8 = scalar_lea.hbm %s1464_s17, 128 }
  0x1a   : > { %s1673_s6 = scalar_select %p1472_p12, 1, 0 }
  0x1b   : > { %p1175_p13 = scmp.ne.s32.totalorder %s1464_s17, %s1174_s8  ;;  %p1176_p0 = pneg %p1468_p11 }
  0x1c   : > { %s1179_s13 = scalar_lea.hbm %s1660_s1, 128  ;;  %p1180_p3 = scmp.lt.s32.totalorder %s1464_s17, %s1660_s1 }
  0x1d   : > { %p1177_p1 = pnand %p1176_p0, %p1175_p13  ;;  %p1181_p4 = scmp.lt.s32.totalorder %s1179_s13, %s1174_s8 }
  0x1f   : > { %p1178_p2 = pneg %p1177_p1  ;;  %p1182_p5 = por %p1181_p4, %p1180_p3 }
  0x21   : > { %p1183_p6 = pnand %p1182_p5, %p1178_p2 }
  0x23   : > { %1186 = shalt.err (!%p1183_p6)
}
  0x24   : > { %s1187_s11 = scalar_lea.vmem %s213_s28, 128  ;;  %s1352_s16 = smov [#allocation8]  }
  0x25   : > { %p1188_p7 = scmp.ne.s32.totalorder %s213_s28, %s1187_s11  ;;  %s1192_s27 = sshll.u32 %s1352_s16, 4  ;;  %s1193_s27 = int_to_ptr.vmem [resolvable:$false] %s1192_s27 }
  0x26   : > { %s1194_s9 = scalar_lea.vmem %s1193_s27, 256  ;;  %p1195_p13 = scmp.lt.s32.totalorder %s213_s28, %s1193_s27 }
  0x27   : > { %p1190_p9 = pnand %p1188_p7, %p1176_p0  ;;  %p1196_p1 = scmp.lt.s32.totalorder %s1194_s9, %s1187_s11 }
  0x29   : > { %p1191_p10 = pneg %p1190_p9  ;;  %p1197_p8 = por %p1196_p1, %p1195_p13 }
  0x2b   : > { %p1198_p12 = pnand %p1197_p8, %p1191_p10 }
  0x2d   : > { %1201 = shalt.err (!%p1198_p12)
}
  0x2e   : > { %1049 = dma.hbm_to_vmem [thread:$0]  (!%p1468_p11), %s1464_s17, 128, %s213_s28, %s1476_s29  }
  0x2f   : > { %p69_p0 = scmp.ne.s32.totalorder %s1342_s22, %s1338_s21  ;;  %p1666_p8 = scmp.eq.s32.totalorder %s1430_s25, 0 }
  0x30   : > { %p95_p12 = scmp.ne.s32.totalorder %s1330_s19, %s1326_s18  ;;  %p900_p2 = scmp.ge.s32.totalorder %s1350_s24, 1 }
  0x31   : > { %p1501_p3 = por %p1666_p8, %p69_p0  ;;  %p174_p4 = scmp.lt.s32.totalorder %s1350_s24, 3 }
  0x32   : > { %p1508_p5 = por %p95_p12, %p1666_p8  ;;  %s1353_s21 = smov [#allocation5]  }
  0x33   : > { %s1674_s9 = scalar_select %p1501_p3, 1, 0 }
  0x34   : > { %s1675_s30 = scalar_select %p1508_p5, 1, 0 }
  0x35   : > { %p1512_p6 = pnand %p900_p2, %p174_p4  ;;  %s187_s17 = sshll.u32 %s1353_s21, 4  ;;  %s188_s17 = int_to_ptr.vmem [resolvable:$true] %s187_s17 }
  0x36   : > { %s221_s18 = sand.u32 1, %s1334_s20   ;;  %s961_s12 = sshll.u32 %s1350_s24, 7 }
  0x37   : > { %s1676_s8 = scalar_select %p1512_p6, 1, 0 }
  0x38   : > { %p1042_p11 = pneg %p1512_p6  ;;  %s906_s28 = sshll.u32 %s221_s18, 7 }
  0x39   : > { %s1529_s15 = scalar_lea.hbm %s1661_s2, %s961_s12  ;;  %s223_s11 = scalar_lea.vmem [#allocation10], %s906_s28 }
  0x3a   : > { %p1522_p7 = pnand %p1042_p11, %p1666_p8  ;;  %s230_s16 = sshll.u32 %s223_s11, 4  ;;  %s1531_s16 = int_to_ptr.vmem [resolvable:$true] %s230_s16 }
  0x3b   : > { %s1213_s27 = scalar_lea.vmem %s188_s17, 64  ;;  %p1221_p0 = scmp.lt.s32.totalorder %s188_s17, %s188_s17 }
  0x3c   : > { %p1204_p9 = pneg %p1522_p7  ;;  %p1214_p10 = scmp.ne.s32.totalorder %s188_s17, %s1213_s27 }
  0x3d   : > { %p1222_p12 = scmp.lt.s32.totalorder %s1213_s27, %s1213_s27 }
  0x3e   : > { %p1216_p13 = pnand %p1214_p10, %p1204_p9 }
  0x3f   : > { %p1223_p2 = por %p1222_p12, %p1221_p0 }
  0x40   : > { %p1217_p1 = pneg %p1216_p13 }
  0x42   : > { %p1224_p4 = pnand %p1223_p2, %p1217_p1 }
  0x44   : > { %1227 = shalt.err (!%p1224_p4)
}
  0x45   : > { %1045 = dma.hbm_to_vmem [thread:$0]  (!%p1522_p7), %s1659_s0, 64, %s188_s17, [#allocation6]  }
  0x46   : > { %s1228_s18 = scalar_lea.hbm %s1529_s15, 2048  ;;  %p1678_p8 = scmp.ne.s32.totalorder %s1673_s6, 0 }
  0x47   : > { %p1229_p11 = scmp.ne.s32.totalorder %s1529_s15, %s1228_s18  ;;  %s1233_s13 = scalar_lea.hbm %s1661_s2, 4096 }
  0x48   : > { %p1230_p9 = pneg %p1678_p8  ;;  %p1234_p1 = scmp.lt.s32.totalorder %s1529_s15, %s1661_s2 }
  0x49   : > { %p1235_p0 = scmp.lt.s32.totalorder %s1233_s13, %s1228_s18 }
  0x4a   : > { %p1231_p10 = pnand %p1230_p9, %p1229_p11 }
  0x4b   : > { %p1236_p12 = por %p1235_p0, %p1234_p1 }
  0x4c   : > { %p1232_p13 = pneg %p1231_p10 }
  0x4e   : > { %p1237_p2 = pnand %p1236_p12, %p1232_p13 }
  0x50   : > { %1240 = shalt.err (!%p1237_p2)
}
  0x51   : > { %s1241_s17 = scalar_lea.vmem %s1531_s16, 2048  ;;  %s1354_s11 = smov [#allocation10]  }
  0x52   : > { %p1242_p7 = scmp.ne.s32.totalorder %s1531_s16, %s1241_s17  ;;  %s1246_s27 = sshll.u32 %s1354_s11, 4  ;;  %s1247_s27 = int_to_ptr.vmem [resolvable:$false] %s1246_s27 }
  0x53   : > { %s1248_s24 = scalar_lea.vmem %s1247_s27, 4096  ;;  %p1249_p10 = scmp.lt.s32.totalorder %s1531_s16, %s1247_s27 }
  0x54   : > { %p1244_p4 = pnand %p1242_p7, %p1230_p9  ;;  %p1250_p5 = scmp.lt.s32.totalorder %s1248_s24, %s1241_s17 }
  0x56   : > { %p1245_p11 = pneg %p1244_p4  ;;  %p1251_p3 = por %p1250_p5, %p1249_p10 }
  0x58   : > { %p1252_p6 = pnand %p1251_p3, %p1245_p11 }
  0x5a   : > { %1255 = shalt.err (!%p1252_p6)
}
  0x5b   : > { %s1355_s21 = smov 256   ;;  %s1356_s18 = smov 128  }
  0x5c   : > { %s1357_s28 = smov 8   ;;  %p1679_p9 = scmp.ne.s32.totalorder %s1676_s8, 0 }
  0x5d   : > { %1052 = dma.hbm_to_vmem [thread:$0]  (!%p1678_p8), %s1529_s15, 2048, %s1531_s16, %s1476_s29, %s1355_s21, %s1356_s18, %s1357_s28  }
  0x5e   : > { %250 = sbr.rel (%p1679_p9) target bundleno = 873 (0x369), region = 36  ;;  %p1680_p13 = scmp.eq.s32.totalorder (!%p1679_p9), %s1430_s25, 0 }
  0x63   : > { %1305 = dma.done.wait (%p1680_p13), [#allocation6], 64   ;;  %p1681_p1 = pmov %p1680_p13 }
  0x64   : > { %s256_s12 = sand.u32 1, %s1430_s25   ;;  %s258_s13 = sand.u32 1, %s1342_s22  }
  0x65   : > { %1307 = vsyncadd (%p1681_p1), [#allocation6], 4294967232  ;;  %s1567_s14 = sshll.u32 %s258_s13, 3  ;;  %s257_s7 = scalar_lea.sflag [#allocation9], %s256_s12 }
  0x66   : > { %s260_s6 = scalar_lea.vmem [#allocation8], %s1567_s14  ;;  %p1682_p8 = scmp.ne.s32.totalorder %s1674_s9, 0 }
  0x68   : > { %1309 = dma.done.wait (%p1682_p8), %s257_s7, 128  }
  0x69   : > { %1311 = vsyncadd (%p1682_p8), %s257_s7, 4294967168  ;;  %s267_s29 = sand.u32 1, %s1330_s19   ;;  %p1683_p3 = scmp.ne.s32.totalorder %s1675_s30, 0 }
  0x6a   : > { %s912_s8 = sshll.u32 %s267_s29, 7 }
  0x6b   : > { %s1575_s15 = scalar_lea.vmem [#allocation10], %s912_s8 }
  0x6c   : > { %1313 = dma.done.wait (%p1683_p3), %s257_s7, 2048  }
  0x6d   : > { %1315 = vsyncadd (%p1683_p3), %s257_s7, 4294965248  ;;  %s913_s16 = sshll.u32 %s1430_s25, 1  ;;  %p1684_p6 = scmp.ne.s32.totalorder %s1430_s25, 0 }
  0x6e   : > { %p305_p5 = scmp.lt.s32.totalorder %s913_s16, 3 }
  0x6f   : > { %313 = sbr.rel (%p1684_p6) target bundleno = 118 (0x76), region = 52 }
  0x70   : > { %s1696_s16 = smov (!%p305_p5, %s913_s16), 3 }
  0x71   : > { %s1585_s9 = scalar_lea.vmem %s1662_s3, %s1696_s16 }
  0x74   : > { %v1358_v0 = vmov 0.0  }
  0x75   : > { %314 = vst [vmem:[#allocation3] sm:$0xff] %v1358_v0  ;;  %315 = vst [vmem:[#allocation4] sm:$0xff] %v1358_v0 }
  0x76 PF: > { %p915_p0 = scmp.ge.s32.totalorder %s1430_s25, 1 }
  0x77   : > { %s963_s30 = sshll.u32 (!%p915_p0), %s1430_s25, 3 }
  0x78   : > { %319 = sbr.rel (%p915_p0) target bundleno = 372 (0x174), region = 56  ;;  %s482_s27 = scalar_lea.vmem (!%p915_p0), [#allocation2], %s963_s30 }
  0x7d   : > { %v1126_v1 = vld [vmem:[%s1575_s15 + $0x74] ss:$8 sps:$4 sm:$0xff]   ;;  %v1128_v2 = vld [vmem:[%s1575_s15 + $0x70] ss:$8 sps:$4 sm:$0xff]   ;;  %v1359_v3 = vmov 0   ;;  %v339_v19 = vlaneseq }
  0x7e   : > { %461 = vmatprep.mubr.bf16.mxu0 %v1359_v3  ;;  %429 = vmatprep.subr.bf16.mxu0 %v1126_v1  ;;  %v1129_v4 = vld [vmem:[%s1575_s15 + $0x64] ss:$8 sps:$4 sm:$0xff]   ;;  %v1131_v5 = vld [vmem:[%s1575_s15 + $0x60] ss:$8 sps:$4 sm:$0xff]   ;;  %v1132_v6 = vld [vmem:[%s1575_s15 + $0x54] ss:$8 sps:$4 sm:$0xff]  }
  0x7f   : > { %430 = vmatpush1.bf16.msra.mxu0 %v1128_v2  ;;  %v1134_v7 = vld [vmem:[%s1575_s15 + $0x50] ss:$8 sps:$4 sm:$0xff]   ;;  %v1135_v8 = vld [vmem:[%s1575_s15 + $0x44] ss:$8 sps:$4 sm:$0xff]   ;;  %v1137_v9 = vld [vmem:[%s1575_s15 + $0x40] ss:$8 sps:$4 sm:$0xff]  }
  0x80   : > { %431 = vmatprep.subr.bf16.mxu0 %v1129_v4  ;;  %v1138_v10 = vld [vmem:[%s1575_s15 + $0x34] ss:$8 sps:$4 sm:$0xff]   ;;  %v1140_v11 = vld [vmem:[%s1575_s15 + $0x30] ss:$8 sps:$4 sm:$0xff]   ;;  %v1141_v12 = vld [vmem:[%s1575_s15 + $0x24] ss:$8 sps:$4 sm:$0xff]  }
  0x81   : > { %v1143_v13 = vld [vmem:[%s1575_s15 + $0x20] ss:$8 sps:$4 sm:$0xff]   ;;  %v1144_v14 = vld [vmem:[%s1575_s15 + $0x14] ss:$8 sps:$4 sm:$0xff]   ;;  %v1146_v15 = vld [vmem:[%s1575_s15 + $0x10] ss:$8 sps:$4 sm:$0xff]  }
  0x82   : > { %v1147_v16 = vld [vmem:[%s1575_s15 + $0x4] ss:$8 sps:$4 sm:$0xff]   ;;  %v1149_v17 = vld [vmem:[%s1575_s15] ss:$8 sps:$4 sm:$0xff]   ;;  %v340_v20 = vshrl.u32 %v339_v19, 7 }
  0x83   : > { %432 = vmatpush1.bf16.msra.mxu0 %v1131_v5  ;;  %v320_v18 = vld [vmem:[#allocation5] sm:$0xf]  ;;  %v337_v22 = vld [vmem:[%s1585_s9] sm:$0x3] }
  0x84   : > { %433 = vmatprep.subr.bf16.mxu0 %v1132_v6  ;;  %v341_v21 = vsub.s32 0, %v340_v20  ;;  %v345_v23 = vsub.s32 1, %v340_v20 }
  0x86   : > { %v342_v24 = vrot.slane %v337_v22, %v341_v21  ;;  %v346_v25 = vrot.slane %v337_v22, %v345_v23 }
  0x87   : > { %434 = vmatpush1.bf16.msra.mxu0 %v1134_v7 }
  0x88   : > { %435 = vmatprep.subr.bf16.mxu0 %v1135_v8 }
  0x8b   : > { %436 = vmatpush1.bf16.msra.mxu0 %v1137_v9 }
  0x8c   : > { %437 = vmatprep.subr.bf16.mxu0 %v1138_v10 }
  0x8f   : > { %438 = vmatpush1.bf16.msra.mxu0 %v1140_v11 }
  0x90   : > { %439 = vmatprep.subr.bf16.mxu0 %v1141_v12 }
  0x93   : > { %440 = vmatpush1.bf16.msra.mxu0 %v1143_v13 }
  0x94   : > { %441 = vmatprep.subr.bf16.mxu0 %v1144_v14 }
  0x97   : > { %442 = vmatpush1.bf16.msra.mxu0 %v1146_v15 }
  0x98   : > { %443 = vmatprep.subr.bf16.mxu0 %v1147_v16 }
  0x9b   : > { %444 = vmatpush1.bf16.msra.mxu0 %v1149_v17 }
  0x9e   : > { %462 = vmatmul.mubr.bf16.vlgmr.msra.gmra.mxu0 %v320_v18 }
 0x15e   : > { %v463_v26 = vpop.f32.mrf.mxu0 }
 0x15f   : > { %v464_v27 = vadd.f32 %v463_v26, %v342_v24 }
 0x160   : > { %v465_v28 = vpop.f32.mrf.mxu0 }
 0x161   : > { %v466_v29 = vadd.f32 %v465_v28, %v346_v25  ;;  %1150 = vtanh.f32 %v464_v27 }
 0x162   : > { %v467_v30 = vpop.f32.mrf.mxu0 }
 0x163   : > { %1152 = vtanh.f32 %v466_v29 }
 0x164   : > { %v468_v31 = vpop.f32.mrf.mxu0 }
 0x16e   : > { %v1151_v32 = vpop.eup %1150 }
 0x170   : > { %v1153_v33 = vpop.eup %1152 }
 0x171   : > { %v962_v34 = vpack.c.bf16 %v1153_v33, %v1151_v32 }
 0x173   : > { %483 = vst [vmem:[%s482_s27] sm:$0xff] %v962_v34 }
 0x174 PF: > { %p935_p12 = scmp.lt.s32.totalorder %s1430_s25, 1 }
 0x176   : > { %487 = sbr.rel (%p935_p12) target bundleno = 649 (0x289), region = 60 }
 0x17b   : > { %v1360_v35 = vmov 0.0   ;;  %v1154_v36 = vld [vmem:[%s1575_s15 + $0x70] ss:$8 sps:$4 sm:$0xff]   ;;  %v1155_v37 = vld [vmem:[%s1575_s15 + $0x74] ss:$8 sps:$4 sm:$0xff]   ;;  %vm1361_vm0 = vmmov 0  }
 0x17c   : > { %982 = vmatprep.subr.bf16.mxu0 %v1360_v35  ;;  %1002 = vmatprep.subr.bf16.mxu1 %v1360_v35  ;;  %v1156_v38 = vld [vmem:[%s1575_s15 + $0x60] ss:$8 sps:$4 sm:$0xff]   ;;  %v1157_v39 = vld [vmem:[%s1575_s15 + $0x64] ss:$8 sps:$4 sm:$0xff]   ;;  %v1158_v40 = vld [vmem:[%s1575_s15 + $0x50] ss:$8 sps:$4 sm:$0xff]  }
 0x17d   : > { %998 = vmatprep.mubr.msk.bf16.mxu0 %vm1361_vm0, %v1360_v35  ;;  %1018 = vmatprep.mubr.msk.bf16.mxu1 %vm1361_vm0, %v1360_v35  ;;  %v1159_v41 = vld [vmem:[%s1575_s15 + $0x54] ss:$8 sps:$4 sm:$0xff]   ;;  %v1160_v42 = vld [vmem:[%s1575_s15 + $0x40] ss:$8 sps:$4 sm:$0xff]   ;;  %v1161_v43 = vld [vmem:[%s1575_s15 + $0x44] ss:$8 sps:$4 sm:$0xff]  }
 0x17e   : > { %983 = vmatpush3.bf16.msra.mxu0 %v1154_v36  ;;  %1003 = vmatpush3.bf16.msra.mxu1 %v1155_v37  ;;  %v1162_v44 = vld [vmem:[%s1575_s15 + $0x30] ss:$8 sps:$4 sm:$0xff]   ;;  %v1163_v45 = vld [vmem:[%s1575_s15 + $0x34] ss:$8 sps:$4 sm:$0xff]   ;;  %v1164_v46 = vld [vmem:[%s1575_s15 + $0x20] ss:$8 sps:$4 sm:$0xff]  }
 0x17f   : > { %984 = vmatprep.subr.bf16.mxu0 %v1360_v35  ;;  %1004 = vmatprep.subr.bf16.mxu1 %v1360_v35  ;;  %v1165_v47 = vld [vmem:[%s1575_s15 + $0x24] ss:$8 sps:$4 sm:$0xff]   ;;  %v1166_v48 = vld [vmem:[%s1575_s15 + $0x10] ss:$8 sps:$4 sm:$0xff]   ;;  %v1167_v49 = vld [vmem:[%s1575_s15 + $0x14] ss:$8 sps:$4 sm:$0xff]  }
 0x180   : > { %v1168_v50 = vld [vmem:[%s1575_s15] ss:$8 sps:$4 sm:$0xff]   ;;  %v1169_v51 = vld [vmem:[%s1575_s15 + $0x4] ss:$8 sps:$4 sm:$0xff]   ;;  %v488_v52 = vld [vmem:[#allocation2] sm:$0xf] }
 0x181   : > { %v505_v53 = vld [vmem:[#allocation2 + $0x4] sm:$0xf]  ;;  %v936_v54 = vld [vmem:[%s1585_s9] ss:$0 sm:$0xff]  ;;  %v945_v55 = vld [vmem:[%s1585_s9 + $0x1] ss:$0 sm:$0xff] }
 0x182   : > { %985 = vmatpush3.bf16.msra.mxu0 %v1156_v38  ;;  %1005 = vmatpush3.bf16.msra.mxu1 %v1157_v39  ;;  %v717_v18 = vld [vmem:[%s260_s6] sm:$0xff]  ;;  %v744_v30 = vld [vmem:[#allocation4] sm:$0xff] }
 0x183   : > { %986 = vmatprep.subr.bf16.mxu0 %v1360_v35  ;;  %1006 = vmatprep.subr.bf16.mxu1 %v1360_v35  ;;  %v741_v27 = vld [vmem:[#allocation3] sm:$0xff] }
 0x186   : > { %987 = vmatpush3.bf16.msra.mxu0 %v1158_v40  ;;  %1007 = vmatpush3.bf16.msra.mxu1 %v1159_v41 }
 0x187   : > { %988 = vmatprep.subr.bf16.mxu0 %v1360_v35  ;;  %1008 = vmatprep.subr.bf16.mxu1 %v1360_v35 }
 0x18a   : > { %989 = vmatpush3.bf16.msra.mxu0 %v1160_v42  ;;  %1009 = vmatpush3.bf16.msra.mxu1 %v1161_v43 }
 0x18b   : > { %990 = vmatprep.subr.bf16.mxu0 %v1360_v35  ;;  %1010 = vmatprep.subr.bf16.mxu1 %v1360_v35 }
 0x18e   : > { %991 = vmatpush3.bf16.msra.mxu0 %v1162_v44  ;;  %1011 = vmatpush3.bf16.msra.mxu1 %v1163_v45 }
 0x18f   : > { %992 = vmatprep.subr.bf16.mxu0 %v1360_v35  ;;  %1012 = vmatprep.subr.bf16.mxu1 %v1360_v35 }
 0x192   : > { %993 = vmatpush3.bf16.msra.mxu0 %v1164_v46  ;;  %1013 = vmatpush3.bf16.msra.mxu1 %v1165_v47 }
 0x193   : > { %994 = vmatprep.subr.bf16.mxu0 %v1360_v35  ;;  %1014 = vmatprep.subr.bf16.mxu1 %v1360_v35 }
 0x196   : > { %995 = vmatpush3.bf16.msra.mxu0 %v1166_v48  ;;  %1015 = vmatpush3.bf16.msra.mxu1 %v1167_v49 }
 0x197   : > { %996 = vmatprep.subr.bf16.mxu0 %v1360_v35  ;;  %1016 = vmatprep.subr.bf16.mxu1 %v1360_v35 }
 0x19a   : > { %997 = vmatpush3.bf16.msra.mxu0 %v1168_v50  ;;  %1017 = vmatpush3.bf16.msra.mxu1 %v1169_v51 }
 0x19d   : > { %999 = vmatmul.mubr.bf16.vlgmr.msra.gmra.mxu0 %v488_v52  ;;  %1019 = vmatmul.mubr.bf16.vlgmr.msra.gmra.mxu1 %v505_v53 }
 0x25d   : > { %v611_v56 = vpop.f32.mrf.mxu0  ;;  %v706_v58 = vpop.f32.mrf.mxu1 }
 0x25e   : > { %v612_v57 = vadd.f32 %v936_v54, %v611_v56  ;;  %v707_v59 = vadd.f32 %v945_v55, %v706_v58 }
 0x25f   : > { %v1000_v60 = vpop.f32.mrf.mxu0  ;;  %v1020_v62 = vpop.f32.mrf.mxu1 }
 0x260   : > { %v718_v61 = vrot.slane %v612_v57, 4  ;;  %1170 = vtanh.f32 %v707_v59  ;;  %v735_v21 = vsub.f32 %v612_v57, %v717_v18 }
 0x261   : > { %v614_v63 = vpop.f32.mrf.mxu0  ;;  %v709_v1 = vpop.f32.mrf.mxu1 }
 0x262   : > { %v719_v0 = vadd.f32 %v718_v61, %v612_v57  ;;  %v736_v25 = vmul.f32 %v735_v21, %v735_v21 }
 0x263   : > { %v1001_v2 = vpop.f32.mrf.mxu0  ;;  %v1021_v4 = vpop.f32.mrf.mxu1 }
 0x264   : > { %v720_v3 = vrot.slane %v719_v0, 2 }
 0x266   : > { %v721_v5 = vadd.f32 %v720_v3, %v719_v0 }
 0x268   : > { %v722_v6 = vrot.slane %v721_v5, 1 }
 0x26a   : > { %v723_v7 = vadd.f32 %v722_v6, %v721_v5 }
 0x26c   : > { %v725_v8 = vmul.f32 0.125, %v723_v7 }
 0x26d   : > { %v1171_v9 = vpop.eup %1170 }
 0x26e   : > { %v726_v10 = vsub.f32 %v612_v57, %v725_v8  ;;  %v713_v11 = vsub.f32 0.0, %v1171_v9 }
 0x270   : > { %v727_v12 = vmul.f32 %v726_v10, %v726_v10  ;;  %v714_v13 = vmul.f32 1.442695, %v713_v11 }
 0x272   : > { %v728_v14 = vrot.slane %v727_v12, 4  ;;  %1172 = vpow2.f32 %v714_v13 }
 0x274   : > { %v729_v15 = vadd.f32 %v728_v14, %v727_v12 }
 0x276   : > { %v730_v16 = vrot.slane %v729_v15, 2 }
 0x278   : > { %v731_v17 = vadd.f32 %v730_v16, %v729_v15 }
 0x27a   : > { %v732_v19 = vrot.slane %v731_v17, 1 }
 0x27c   : > { %v733_v20 = vadd.f32 %v732_v19, %v731_v17 }
 0x27e   : > { %v734_v22 = vmul.f32 0.125, %v733_v20 }
 0x27f   : > { %v1173_v23 = vpop.eup %1172 }
 0x280   : > { %v738_v24 = vadd.f32 %v734_v22, %v727_v12  ;;  %v716_v26 = vmul.f32 0.5, %v1173_v23 }
 0x282   : > { %v737_v28 = vmul.f32 %v736_v25, %v716_v26  ;;  %v739_v29 = vmul.f32 %v738_v24, %v716_v26 }
 0x284   : > { %v740_v31 = vsub.f32 %v739_v29, %v737_v28  ;;  %v742_v32 = vadd.f32 %v741_v27, %v737_v28 }
 0x286   : > { %743 = vst [vmem:[#allocation3] sm:$0xff] %v742_v32  ;;  %v745_v33 = vadd.f32 %v744_v30, %v740_v31 }
 0x288   : > { %746 = vst [vmem:[#allocation4] sm:$0xff] %v745_v33 }
 0x289 PF: > { %p954_p2 = scmp.ne.s32.totalorder %s1430_s25, 1 }
 0x28b   : > { %750 = sbr.rel (%p954_p2) target bundleno = 864 (0x360), region = 64 }
 0x290   : > { %v751_v34 = vld [vmem:[#allocation3] sm:$0xff]  ;;  %v765_v35 = vld [vmem:[#allocation4] sm:$0xff] }
 0x291   : > { %752 = vadd.xlane.f32.xlu0 %v751_v34 }
 0x295   : > { %766 = vadd.xlane.f32.xlu0 %v765_v35 }
 0x31a   : > { %v753_v36 = vpop.xlane.xlu0 %752 }
 0x31b   : > { %v754_v37 = vrot.slane %v753_v36, 4 }
 0x31d   : > { %v755_v38 = vadd.f32 %v754_v37, %v753_v36 }
 0x31e   : > { %v767_v39 = vpop.xlane.xlu0 %766 }
 0x31f   : > { %v756_v40 = vrot.slane %v755_v38, 2  ;;  %v768_v41 = vrot.slane %v767_v39, 4 }
 0x321   : > { %v769_v42 = vadd.f32 %v768_v41, %v767_v39  ;;  %v757_v43 = vadd.f32 %v756_v40, %v755_v38 }
 0x323   : > { %v770_v44 = vrot.slane %v769_v42, 2  ;;  %v758_v45 = vrot.slane %v757_v43, 1 }
 0x325   : > { %v771_v46 = vadd.f32 %v770_v44, %v769_v42  ;;  %v759_v47 = vadd.f32 %v758_v45, %v757_v43 }
 0x327   : > { %1022 = vpush %v759_v47  ;;  %v772_v48 = vrot.slane %v771_v46, 1 }
 0x329   : > { %v773_v49 = vadd.f32 %v772_v48, %v771_v46 }
 0x32b   : > { %1024 = vpush %v773_v49 }
 0x358   : > { %s1023_s24 = spop %1022 }
 0x359   : > { %s761_s21 = ssub.f32 0.0, %s1023_s24 }
 0x35b   : > { %s762_s18 = smul.f32 0.125, %s761_s21 }
 0x35c   : > { %s1025_s28 = spop %1024 }
 0x35d   : > { %764 = sst [smem:[#allocation11]] %s762_s18  ;;  %s775_s12 = smul.f32 0.125, %s1025_s28 }
 0x35f   : > { %777 = sst [smem:[#allocation12]] %s775_s12 }
 0x360 PF: > { %p1056_p7 = scmp.eq.s32.totalorder %s1430_s25, 1  ;;  %s1362_s13 = smov [#allocation11]  }
 0x361   : > { %s1363_s6 = smov [#allocation12]  }
 0x362   : > { %1035 = dma.smem_to_hbm (%p1056_p7), %s1362_s13, 16, %s1663_s4, [#allocation7]  }
 0x363   : > { %1037 = dma.smem_to_hbm (%p1056_p7), %s1363_s6, 16, %s1664_s5, [#allocation13]  }
 0x364   : > { %1317 = dma.done.wait (%p1056_p7), [#allocation7], 16  }
 0x365   : > { %1319 = vsyncadd (%p1056_p7), [#allocation7], 4294967280 }
 0x366   : > { %1321 = dma.done.wait (%p1056_p7), [#allocation13], 16  }
 0x367   : > { %1323 = vsyncadd (%p1056_p7), [#allocation13], 4294967280 }
 0x368   : > { %804 = sfence }
 0x369 PF: > { %s1685_s25 = sld [smem:[#allocation19_spill]]  ;;  %p19_p4 = scmp.ge.s32.totalorder %s1433_s26, 4  }
 0x36a   : > { %s1686_s18 = smov %s1330_s19  ;;  %s1687_s19 = smov %s1334_s20 }
 0x36b   : > { %s1688_s20 = smov %s1453_s10  ;;  %s1689_s21 = smov %s1342_s22 }
 0x36c   : > { %s1690_s22 = smov %s1346_s23  ;;  %s1692_s24 = smov %s1433_s26 }
 0x36d   :  { %21 = sbr.rel (!%p19_p4) target bundleno = 8 (0x8), region = 119 }
 0x36f   : > { %s1691_s23 = smov %s1685_s25 }
 0x372   :  { %810 = vsyncpa [#allocation6], 1 }
 0x373   :  { %812 = vsyncpa [#allocation6 + $0x1], 1 }
 0x374   :  { %813 = vsyncpa [#allocation9], 1 }
 0x375   :  { %815 = vsyncpa [#allocation9 + $0x1], 1 }
 0x376   :  { %816 = vsyncpa [#allocation7], 1 }
 0x377   :  { %818 = vsyncpa [#allocation7 + $0x1], 1 }
 0x378   :  { %819 = vsyncpa [#allocation13], 1 }

</bundles_post_ra>
